<compile_context>
chip_gen: v7x
topology: tpu7x:2x2x1
jax: 0.10.0
libtpu: 0.0.40
codegen_flags: <defaults>
</compile_context>

<pallas_src>
import jax
import jax.numpy as jnp
from jax.experimental import pallas as pl
from jax.experimental.pallas import tpu as pltpu

LANES = 128
MAX_BLOCK_ROWS = 2048  # 2048 x 128 x 4B = 1 MiB per f32 buffer


def _gauss_kernel(params_ref, x_ref, o_ref):
    # params_ref lives in SMEM: [a, mu, sigma1, sigma2] (already clamped).
    # Read scalars once; their vector broadcasts are built once per invocation.
    a = params_ref[0]
    mu = params_ref[1]
    sigma1 = params_ref[2]
    sigma2 = params_ref[3]

    # Upcast per-vreg to f32 for exp (needed on v5e; free-ish VALU work),
    # store back in the I/O dtype.
    x = x_ref[...].astype(jnp.float32)
    d = x - mu
    d2 = d * d
    cond = x < mu
    # Single exp: select sigma first (bit-identical to the two-branch form).
    sigma = jnp.where(cond, sigma1, sigma2)
    e = jnp.exp(-sigma * d2)
    out = jnp.where(cond, a * e, 1.0 + (a - 1.0) * e)
    o_ref[...] = out.astype(o_ref.dtype)


def gauss_activation_v2(x, a, mu, sigma1, sigma2):
    """Elementwise GaussActivationv2 forward (matches the PyTorch module)."""
    orig_shape = x.shape
    orig_dtype = x.dtype
    n = x.size

    # Clamp params exactly as the PyTorch forward does before use.
    params = jnp.stack([
        jnp.maximum(jnp.asarray(a, jnp.float32), 1.01),
        jnp.maximum(jnp.asarray(mu, jnp.float32), 0.1),
        jnp.maximum(jnp.asarray(sigma1, jnp.float32), 0.1),
        jnp.maximum(jnp.asarray(sigma2, jnp.float32), 0.1),
    ])

    # Flatten to a lane-dense 2D slab.  Only pad to a multiple of 128 lanes if
    # strictly necessary (typical NCHW sizes divide 128, so no pad/slice pass).
    x_flat = x.reshape(-1)
    n_pad = (-n) % LANES
    if n_pad:
        x_flat = jnp.pad(x_flat, (0, n_pad))
    rows = x_flat.size // LANES
    x2d = x_flat.reshape(rows, LANES)

    # Large row-tiles; ragged last block is handled by cdiv grid (no padding).
    # If the whole slab fits in one block, use the full (possibly non-multiple
    # -of-8) row extent, which is always a legal block shape.
    block_rows = rows if rows <= MAX_BLOCK_ROWS else MAX_BLOCK_ROWS
    grid = (pl.cdiv(rows, block_rows),)

    itemsize = jnp.dtype(orig_dtype).itemsize
    cost = pl.CostEstimate(
        flops=6 * n,
        transcendentals=n,
        bytes_accessed=2 * n * itemsize,
    )

    out2d = pl.pallas_call(
        _gauss_kernel,
        out_shape=jax.ShapeDtypeStruct((rows, LANES), orig_dtype),
        grid_spec=pltpu.PrefetchScalarGridSpec(
            num_scalar_prefetch=0,
            grid=grid,
            in_specs=[
                pl.BlockSpec(memory_space=pltpu.MemorySpace.SMEM),   # params (4,)
                pl.BlockSpec((block_rows, LANES), lambda i: (i, 0)),  # x tile
            ],
            out_specs=pl.BlockSpec((block_rows, LANES), lambda i: (i, 0)),
        ),
        compiler_params=pltpu.CompilerParams(
            dimension_semantics=("parallel",)),   # shards across TCs on v7x
        cost_estimate=cost,
    )(params, x2d)

    out = out2d.reshape(-1)
    if n_pad:
        out = out[:n]
    return out.reshape(orig_shape)


def _reference(x, a, mu, sigma1, sigma2):
    a = jnp.maximum(a, 1.01)
    mu = jnp.maximum(mu, 0.1)
    sigma1 = jnp.maximum(sigma1, 0.1)
    sigma2 = jnp.maximum(sigma2, 0.1)
    left = a * jnp.exp(-sigma1 * (x - mu) ** 2)
    right = 1.0 + (a - 1.0) * jnp.exp(-sigma2 * (x - mu) ** 2)
    return jnp.where(x < mu, left, right)


if __name__ == "__main__":
    key = jax.random.PRNGKey(0)
    # NCHW input, small shape consistent with a conv-feature-map activation.
    x = jax.random.normal(key, (2, 4, 16, 16), dtype=jnp.float32)

    # Deterministic "learned" scalar parameters (module __init__ takes scalars).
    a, mu, sigma1, sigma2 = 1.1, 1.0, 0.5, 0.5

    out = gauss_activation_v2(x, a, mu, sigma1, sigma2)
    out = jax.block_until_ready(out)

    ref = _reference(x, jnp.float32(a), jnp.float32(mu),
                     jnp.float32(sigma1), jnp.float32(sigma2))
    assert out.shape == x.shape and out.dtype == x.dtype
    assert jnp.allclose(out, ref, atol=1e-5, rtol=1e-5)

    print("KERNEL_OK")
</pallas_src>

<mosaic_0001>
module attributes {stable_mosaic.version = 11 : i64} {
  func.func @_gauss_kernel(%arg0: i32, %arg1: memref<4xf32, #tpu.memory_space<smem>>, %arg2: memref<16x128xf32, #tpu.memory_space<vmem>>, %arg3: memref<16x128xf32, #tpu.memory_space<vmem>>) attributes {dimension_semantics = [#tpu.dimension_semantics<parallel>], iteration_bounds = array<i64: 1>, scalar_prefetch = 0 : i64, scratch_operands = 0 : i64, tpu.core_type = #tpu.core_type<tc>, window_params = [{transform_indices = @transform_0, window_bounds = array<i64: 4>}, {transform_indices = @transform_1, window_bounds = array<i64: 16, 128>}, {transform_indices = @transform_2, window_bounds = array<i64: 16, 128>}]} {
    %c0 = arith.constant 0 : index
    %0 = memref.load %arg1[%c0] : memref<4xf32, #tpu.memory_space<smem>>
    %c1 = arith.constant 1 : index
    %1 = memref.load %arg1[%c1] : memref<4xf32, #tpu.memory_space<smem>>
    %c2 = arith.constant 2 : index
    %2 = memref.load %arg1[%c2] : memref<4xf32, #tpu.memory_space<smem>>
    %c3 = arith.constant 3 : index
    %3 = memref.load %arg1[%c3] : memref<4xf32, #tpu.memory_space<smem>>
    %c0_0 = arith.constant 0 : index
    %c0_1 = arith.constant 0 : index
    %4 = vector.load %arg2[%c0_0, %c0_1] : memref<16x128xf32, #tpu.memory_space<vmem>>, vector<16x128xf32>
    %5 = vector.broadcast %1 : f32 to vector<16x128xf32>
    %6 = arith.subf %4, %5 : vector<16x128xf32>
    %7 = arith.mulf %6, %6 : vector<16x128xf32>
    %8 = vector.broadcast %1 : f32 to vector<16x128xf32>
    %9 = arith.cmpf olt, %4, %8 : vector<16x128xf32>
    %10 = vector.broadcast %2 : f32 to vector<16x128xf32>
    %11 = vector.broadcast %3 : f32 to vector<16x128xf32>
    %12 = arith.select %9, %10, %11 : vector<16x128xi1>, vector<16x128xf32>
    %cst = arith.constant 0.000000e+00 : f32
    %13 = vector.broadcast %cst : f32 to vector<16x128xf32>
    %14 = arith.subf %13, %12 : vector<16x128xf32>
    %15 = arith.mulf %14, %7 : vector<16x128xf32>
    %16 = math.exp %15 : vector<16x128xf32>
    %17 = vector.broadcast %0 : f32 to vector<16x128xf32>
    %18 = arith.mulf %17, %16 : vector<16x128xf32>
    %cst_2 = arith.constant 1.000000e+00 : f32
    %19 = arith.subf %0, %cst_2 : f32
    %20 = vector.broadcast %19 : f32 to vector<16x128xf32>
    %21 = arith.mulf %20, %16 : vector<16x128xf32>
    %cst_3 = arith.constant 1.000000e+00 : f32
    %22 = vector.broadcast %cst_3 : f32 to vector<16x128xf32>
    %23 = arith.addf %22, %21 : vector<16x128xf32>
    %24 = arith.select %9, %18, %23 : vector<16x128xi1>, vector<16x128xf32>
    %c0_4 = arith.constant 0 : index
    %c0_5 = arith.constant 0 : index
    %25 = vector.load %arg3[%c0_4, %c0_5] : memref<16x128xf32, #tpu.memory_space<vmem>>, vector<16x128xf32>
    tpu.vector_store %arg3[%c0_4, %c0_5], %24 {strides = array<i32>} : memref<16x128xf32, #tpu.memory_space<vmem>>, vector<16x128xf32>,
    return
  }
  func.func @transform_0(%arg0: i32) -> i32 {
    %c0_i32 = arith.constant 0 : i32
    %c0_i32_0 = arith.constant 0 : i32
    return %c0_i32 : i32
  }
  func.func @transform_1(%arg0: i32) -> (i32, i32) {
    %c0_i32 = arith.constant 0 : i32
    %c0_i32_0 = arith.constant 0 : i32
    return %arg0, %c0_i32 : i32, i32
  }
  func.func @transform_2(%arg0: i32) -> (i32, i32) {
    %c0_i32 = arith.constant 0 : i32
    %c0_i32_0 = arith.constant 0 : i32
    return %arg0, %c0_i32 : i32, i32
  }
}

</mosaic_0001>

<bundles_post_ra>
// kernel: tpu_custom_call.1
= control target key start
LH: loop header
LB: loop body
LE: loop exit
PB: predicated region body
PF: predicated region fallthrough
CT: control target
= control target key end

     0   :  { %7 = vsyncpa [#allocation5], 0  ;;  %s232_s0 = inlined_call_operand.hbm [shape: f32[4], index: 0, kind: input, shape index: {}]   ;;  %s233_s1 = inlined_call_operand.hbm [shape: f32[16,128], index: 1, kind: input, shape index: {}]   ;;  %s234_s2 = inlined_call_operand.hbm [shape: f32[16,128], index: 2, kind: output, shape index: {}]  }
   0x1   :  { %8 = vsyncpa [#allocation3], 0 }
   0x2   :  { %9 = vsyncpa [#allocation4], 0  ;;  %s106_s11 = scalar_lea.hbm %s232_s0, 16 }
   0x3   :  { %p107_p0 = scmp.ne.s32.totalorder %s232_s0, %s106_s11  ;;  %p110_p1 = scmp.lt.u32.totalorder %s106_s11, %s232_s0 }
   0x5   :  { %p112_p2 = pnand %p110_p1, %p107_p0 }
   0x7   :  { %115 = shalt.err (!%p112_p2)
}
   0x8   :  { %s166_s16 = smov [#allocation2]   ;;  %s167_s19 = smov [#allocation6]  }
   0x9   :  { %17 = dma.hbm_to_smem %s232_s0, 16, %s166_s16, [#allocation5]  }
   0xa   :  { %s23_s20 = sshll.u32 %s167_s19, 4  ;;  %s116_s23 = scalar_lea.hbm %s233_s1, 256  ;;  %s24_s20 = int_to_ptr.vmem [resolvable:$true] %s23_s20 }
   0xb   :  { %p117_p3 = scmp.ne.s32.totalorder %s233_s1, %s116_s23  ;;  %p120_p4 = scmp.lt.u32.totalorder %s116_s23, %s233_s1 }
   0xd   :  { %p122_p5 = pnand %p120_p4, %p117_p3 }
   0xf   :  { %125 = shalt.err (!%p122_p5)
}
  0x10   :  { %s126_s28 = scalar_lea.vmem %s24_s20, 256  ;;  %p131_p7 = scmp.lt.s32.totalorder %s24_s20, %s24_s20 }
  0x11   :  { %p127_p6 = scmp.ne.s32.totalorder %s24_s20, %s126_s28  ;;  %p132_p8 = scmp.lt.s32.totalorder %s126_s28, %s126_s28 }
  0x13   :  { %p133_p9 = por %p132_p8, %p131_p7 }
  0x15   :  { %p134_p10 = pnand %p133_p9, %p127_p6 }
  0x17   :  { %137 = shalt.err (!%p134_p10)
}
  0x18   :  { %s168_s0 = smov 128   ;;  %s169_s29 = smov 8  }
  0x19   :  { %29 = dma.hbm_to_vmem [thread:$0]  %s233_s1, 256, %s24_s20, [#allocation3], %s168_s0, %s168_s0, %s169_s29  }
  0x1a   :  { %160 = dma.done.wait [#allocation5], 16  }
  0x1b   :  { %161 = vsyncadd [#allocation5], 4294967280 }
  0x1c   :  { %162 = dma.done.wait [#allocation3], 256  }
  0x1d   :  { %163 = vsyncadd [#allocation3], 4294967040 }
  0x1e   :  { %36 = sfence }
  0x1f   :  { %s93_s4 = sld [smem:[#allocation2 + $0x1]]  ;;  %s94_s5 = sld [smem:[#allocation2 + $0x2]]  ;;  %v41_v0 = vld [vmem:[#allocation6] sm:$0xff]  ;;  %v42_v1 = vld [vmem:[#allocation6 + $0x8] sm:$0xff] }
  0x20   :  { %s95_s6 = sld [smem:[#allocation2 + $0x3]]  ;;  %s37_s1 = sld [smem:[#allocation2]] }
  0x21   :  { %s170_s8 = smov [#allocation7]  }
  0x22   :  { %s80_s9 = sshll.u32 %s170_s8, 4  ;;  %s81_s9 = int_to_ptr.vmem [resolvable:$true] %s80_s9 }
  0x23   :  { %s138_s10 = scalar_lea.vmem %s81_s9, 256  ;;  %p143_p12 = scmp.lt.s32.totalorder %s81_s9, %s81_s9 }
  0x24   :  { %p139_p11 = scmp.ne.s32.totalorder %s81_s9, %s138_s10  ;;  %p144_p13 = scmp.lt.s32.totalorder %s138_s10, %s138_s10 }
  0x25   :  { %v43_v2 = vstv %s93_s4  ;;  %v50_v4 = vstv %s94_s5 }
  0x26   :  { %v44_v3 = vsub.f32 %v41_v0, %v43_v2  ;;  %vm48_vm0 = vcmp.lt.f32.partialorder %v41_v0, %v43_v2  ;;  %v51_v5 = vstv %s95_s6  ;;  %v45_v7 = vsub.f32 %v42_v1, %v43_v2  ;;  %s96_s7 = sadd.f32 -1.0, %s37_s1  ;;  %p145_p0 = por %p144_p13, %p143_p12 }
  0x27   :  { %v52_v6 = vsel %vm48_vm0, %v50_v4, %v51_v5  ;;  %vm49_vm1 = vcmp.lt.f32.partialorder %v42_v1, %v43_v2  ;;  %v62_v17 = vstv %s37_s1 }
  0x28   :  { %v46_v8 = vmul.f32 %v44_v3, %v44_v3  ;;  %v54_v9 = vsub.f32 0.0, %v52_v6  ;;  %v53_v10 = vsel %vm49_vm1, %v50_v4, %v51_v5  ;;  %v47_v11 = vmul.f32 %v45_v7, %v45_v7  ;;  %p146_p1 = pnand %p145_p0, %p139_p11 }
  0x29   :  { %v55_v12 = vsub.f32 0.0, %v53_v10  ;;  %v66_v18 = vstv %s96_s7 }
  0x2a   :  { %v56_v13 = vmul.f32 %v54_v9, %v46_v8 }
  0x2b   :  { %v57_v14 = vmul.f32 %v55_v12, %v47_v11 }
  0x2c   :  { %v58_v15 = vmul.f32 1.442695, %v56_v13 }
  0x2d   :  { %v60_v16 = vmul.f32 1.442695, %v57_v14 }
  0x2e   :  { %102 = vpow2.f32 %v58_v15 }
  0x2f   :  { %104 = vpow2.f32 %v60_v16 }
  0x38   :  { %v103_v19 = vpop.eup %102 }
  0x39   :  { %v105_v20 = vpop.eup %104  ;;  %v63_v21 = vmul.f32 %v103_v19, %v62_v17  ;;  %v67_v22 = vmul.f32 %v103_v19, %v66_v18 }
  0x3a   :  { %v64_v23 = vmul.f32 %v105_v20, %v62_v17  ;;  %v68_v24 = vmul.f32 %v105_v20, %v66_v18 }
  0x3b   :  { %v69_v25 = vadd.f32 1.0, %v67_v22 }
  0x3c   :  { %v70_v26 = vadd.f32 1.0, %v68_v24 }
  0x3d   :  { %v71_v27 = vsel %vm48_vm0, %v63_v21, %v69_v25 }
  0x3e   :  { %73 = vst [vmem:[#allocation7] sm:$0xff] %v71_v27  ;;  %v72_v28 = vsel %vm49_vm1, %v64_v23, %v70_v26 }
  0x3f   :  { %74 = vst [vmem:[#allocation7 + $0x8] sm:$0xff] %v72_v28 }
  0x40   :  { %149 = shalt.err (!%p146_p1)
}
  0x41   :  { %s150_s13 = scalar_lea.hbm %s234_s2, 256 }
  0x42   :  { %p151_p2 = scmp.ne.s32.totalorder %s234_s2, %s150_s13  ;;  %p154_p3 = scmp.lt.u32.totalorder %s150_s13, %s234_s2 }
  0x44   :  { %p156_p4 = pnand %p154_p3, %p151_p2 }
  0x46   :  { %159 = shalt.err (!%p156_p4)
}
  0x47   :  { %86 = dma.vmem_to_hbm [thread:$0]  %s81_s9, 256, %s234_s2, [#allocation4], %s168_s0, %s168_s0, %s169_s29  }
  0x48   :  { %164 = dma.done.wait [#allocation4], 256  }
  0x49   :  { %165 = vsyncadd [#allocation4], 4294967040 }
  0x4a   :  { %90 = vsyncpa [#allocation3], 1 }
  0x4b   :  { %91 = vsyncpa [#allocation4], 1 }
  0x4c   :  { %92 = vsyncpa [#allocation5], 1 }

</bundles_post_ra>
